<compile_context>
chip_gen: v7x
topology: tpu7x:2x2x1
jax: 0.10.0
libtpu: 0.0.40
codegen_flags: <defaults>
</compile_context>

<pallas_src>
import jax
import jax.numpy as jnp
from jax import lax
from jax.experimental import pallas as pl
from jax.experimental.pallas import tpu as pltpu

LANES = 128                       # vreg lane width
SUBLANES = 8                      # f32 sublane tile
TARGET_BLOCK_BYTES = 2 << 20      # ~2 MiB input block per grid step
STRIP_ELEMENTS = 32 * 1024        # ~32 vregs of f32 per register-resident strip
MAX_FREE_LAST_DIM = 8192          # widest last dim kept as the lane axis
MIN_KERNEL_ELEMENTS = 16384       # below this plain XLA beats a kernel launch
BIG = 1e30                        # exp(-1e30) == 0.0 exactly in f32


def _cdiv(a, b):
    return -(-a // b)


def _round_up(a, b):
    return _cdiv(a, b) * b


def _make_sum_exp_kernel(*, negate, tile_r, strip_r, n_rows):
    """Builds a kernel computing sum(exp(+/-x)) over a (n_rows, C) slab.

    Grid is a single "arbitrary" reduction axis over row tiles.  The output
    block index is constant, so out_ref stays VMEM-resident and acts as the
    accumulator.  Per grid step, the tile is processed in register-resident
    strips (unrolled fori_loop) so the exp intermediate never spills.
    """
    n_strips = tile_r // strip_r
    needs_mask = (n_rows % tile_r) != 0   # only the last tile can be ragged

    def kernel(x_ref, out_ref):
        j = pl.program_id(0)

        @pl.when(j == 0)
        def _init():
            out_ref[...] = jnp.zeros_like(out_ref)

        c = x_ref.shape[1]

        def strip_body(s, acc):
            r0 = pl.multiple_of(s * strip_r, strip_r)
            v = x_ref[pl.ds(r0, strip_r), :]            # (strip_r, C)
            if negate:
                v = -v                                   # fold sign of `pos`
            e = jnp.exp(v)
            if needs_mask:
                # Mask rows past the (static) array extent: the boundary
                # block's out-of-bounds rows hold undefined data.
                row = (j * tile_r + r0
                       + lax.broadcasted_iota(jnp.int32, (strip_r, c), 0))
                e = jnp.where(row < n_rows, e, 0.0)
            # Sublane-group reduce: pure VPU adds into an (8, C) register acc.
            return acc + jnp.sum(
                e.reshape(strip_r // SUBLANES, SUBLANES, c), axis=0)

        acc = lax.fori_loop(0, n_strips, strip_body,
                            jnp.zeros((SUBLANES, c), jnp.float32),
                            unroll=True)
        out_ref[...] += acc

    return kernel


def _sum_exp(x, *, negate, min_kernel_elements, target_block_bytes,
             max_tile_rows):
    """sum(exp(-x)) if negate else sum(exp(x)), via a Pallas reduction."""
    x = x.astype(jnp.float32)
    n = int(x.size)
    if n == 0:
        return jnp.float32(0.0)
    if n < min_kernel_elements:
        # Tiny inputs: kernel launch overhead dominates; plain XLA is faster.
        return jnp.sum(jnp.exp(-x if negate else x))

    # Copy-free 2-D view (reshape of a contiguous row-major array is a
    # bitcast in XLA), so the kernel streams each element from HBM once.
    if n % LANES == 0:
        x2 = x.reshape(n // LANES, LANES)                 # lane-dense
    elif x.ndim >= 2 and x.shape[-1] <= MAX_FREE_LAST_DIM:
        x2 = x.reshape(-1, x.shape[-1])                   # keep last dim
    else:
        # Rare edge case (e.g. ragged 1-D): one small pad materialization.
        fill = BIG if negate else -BIG                    # exp(+/-fill) == 0
        x2 = jnp.pad(x.reshape(-1), (0, (-n) % LANES),
                     constant_values=fill).reshape(-1, LANES)

    rows, c = int(x2.shape[0]), int(x2.shape[1])
    c_pad = _round_up(c, LANES)

    # Row tile sized for ~target_block_bytes per grid step (double-buffered).
    tile_r = max(SUBLANES,
                 (target_block_bytes // (c_pad * 4)) // SUBLANES * SUBLANES)
    if max_tile_rows is not None:
        tile_r = min(tile_r, max(SUBLANES,
                                 int(max_tile_rows) // SUBLANES * SUBLANES))
    tile_r = min(tile_r, _round_up(rows, SUBLANES))
    # Strip of ~32 vregs for the in-kernel register-resident loop.
    strip_r = min(tile_r, max(SUBLANES,
                              (STRIP_ELEMENTS // c_pad) // SUBLANES * SUBLANES))
    tile_r = max(strip_r, (tile_r // strip_r) * strip_r)
    steps = _cdiv(rows, tile_r)

    kernel = _make_sum_exp_kernel(negate=negate, tile_r=tile_r,
                                  strip_r=strip_r, n_rows=rows)

    partial = pl.pallas_call(
        kernel,
        out_shape=jax.ShapeDtypeStruct((SUBLANES, c), jnp.float32),
        grid=(steps,),
        in_specs=[pl.BlockSpec((tile_r, c), lambda j: (j, 0))],
        out_specs=pl.BlockSpec((SUBLANES, c), lambda j: (0, 0)),
        compiler_params=pltpu.CompilerParams(
            dimension_semantics=("arbitrary",),
        ),
    )(x2)

    # Tiny (8, C) cross-lane / cross-sublane reduce in plain XLA.
    return jnp.sum(partial)


def pairwise_loss_na(res, *, min_kernel_elements=MIN_KERNEL_ELEMENTS,
                     target_block_bytes=TARGET_BLOCK_BYTES,
                     max_tile_rows=None):
    """JAX/Pallas equivalent of PairWiseLossNA.forward(res)."""
    adaptive_margin, pos, neg = res
    del adaptive_margin  # the module overwrites it with 0 and never uses it
    kw = dict(min_kernel_elements=min_kernel_elements,
              target_block_bytes=target_block_bytes,
              max_tile_rows=max_tile_rows)
    return (_sum_exp(pos, negate=True, **kw)
            + _sum_exp(neg, negate=False, **kw))


if __name__ == "__main__":
    key = jax.random.PRNGKey(0)
    k1, k2, k3, k4, k5, k6 = jax.random.split(key, 6)

    adaptive_margin = jnp.float32(0.5)   # ignored by the module

    # (a) Tiny shapes implied by the module (batch=2, pairs=16): default path
    #     uses the plain-XLA fallback (kernel launch overhead would dominate).
    pos_s = jax.random.normal(k1, (2, 16), dtype=jnp.float32)
    neg_s = jax.random.normal(k2, (2, 16), dtype=jnp.float32)
    ref_s = jnp.sum(jnp.exp(-pos_s)) + jnp.sum(jnp.exp(neg_s))
    out_a = jax.block_until_ready(
        pairwise_loss_na((adaptive_margin, pos_s, neg_s)))
    assert jnp.allclose(out_a, ref_s, rtol=1e-5, atol=1e-4), (out_a, ref_s)

    # (b) Same tiny shapes forced through the Pallas kernel (smallest legal
    #     tile; ragged rows handled by the in-kernel mask).
    out_b = jax.block_until_ready(
        pairwise_loss_na((adaptive_margin, pos_s, neg_s),
                         min_kernel_elements=0))
    assert jnp.allclose(out_b, ref_s, rtol=1e-5, atol=1e-4), (out_b, ref_s)

    # (c) Medium, differently-sized pos/neg with a reduced tile so the kernel
    #     runs a multi-step reduction grid through both copy-free view paths
    #     (pos: 19200 % 128 == 0 -> (150, 128); neg: (48, 250) keeps C = 250)
    #     with masking of the ragged last tile.
    pos_m = 0.5 * jax.random.normal(k3, (64, 300), dtype=jnp.float32)
    neg_m = 0.5 * jax.random.normal(k4, (48, 250), dtype=jnp.float32)
    ref_m = jnp.sum(jnp.exp(-pos_m)) + jnp.sum(jnp.exp(neg_m))
    out_c = jax.block_until_ready(
        pairwise_loss_na((adaptive_margin, pos_m, neg_m),
                         min_kernel_elements=0, max_tile_rows=32))
    assert jnp.allclose(out_c, ref_m, rtol=1e-5, atol=1e-4), (out_c, ref_m)

    # (d) Medium with the default (large-tile) configuration.
    out_d = jax.block_until_ready(
        pairwise_loss_na((adaptive_margin, pos_m, neg_m),
                         min_kernel_elements=0))
    assert jnp.allclose(out_d, ref_m, rtol=1e-5, atol=1e-4), (out_d, ref_m)

    # (e) 1-D ragged inputs exercise the (rare) pad-fallback view with the
    #     sign-aware fill value.
    pos_r = 0.5 * jax.random.normal(k5, (777,), dtype=jnp.float32)
    neg_r = 0.5 * jax.random.normal(k6, (1234,), dtype=jnp.float32)
    ref_r = jnp.sum(jnp.exp(-pos_r)) + jnp.sum(jnp.exp(neg_r))
    out_e = jax.block_until_ready(
        pairwise_loss_na((adaptive_margin, pos_r, neg_r),
                         min_kernel_elements=0))
    assert jnp.allclose(out_e, ref_r, rtol=1e-5, atol=1e-4), (out_e, ref_r)

    print("KERNEL_OK")
</pallas_src>

<mosaic_0001>
module attributes {stable_mosaic.version = 11 : i64} {
  func.func @kernel(%arg0: i32, %arg1: memref<8x16xf32, #tpu.memory_space<vmem>>, %arg2: memref<8x16xf32, #tpu.memory_space<vmem>>) attributes {dimension_semantics = [#tpu.dimension_semantics<arbitrary>], iteration_bounds = array<i64: 1>, scalar_prefetch = 0 : i64, scratch_operands = 0 : i64, tpu.core_type = #tpu.core_type<tc>, window_params = [{transform_indices = @transform_0, window_bounds = array<i64: 8, 16>}, {pipeline_mode = #tpu.pipeline_mode<synchronous>, transform_indices = @transform_1, window_bounds = array<i64: 8, 16>}]} {
    %c0_i32 = arith.constant 0 : i32
    %0 = arith.cmpi eq, %arg0, %c0_i32 : i32
    %1 = arith.extui %0 : i1 to i32
    %c0_i32_0 = arith.constant 0 : i32
    %2 = arith.cmpi ne, %1, %c0_i32_0 : i32
    scf.if %2 {
      %cst_10 = arith.constant 0.000000e+00 : f32
      %26 = vector.broadcast %cst_10 : f32 to vector<8x16xf32>
      %c0_11 = arith.constant 0 : index
      %c0_12 = arith.constant 0 : index
      %27 = vector.load %arg2[%c0_11, %c0_12] : memref<8x16xf32, #tpu.memory_space<vmem>>, vector<8x16xf32>
      tpu.vector_store %arg2[%c0_11, %c0_12], %26 {strides = array<i32>} : memref<8x16xf32, #tpu.memory_space<vmem>>, vector<8x16xf32>,
    } else {
    }
    %cst = arith.constant 0.000000e+00 : f32
    %3 = vector.broadcast %cst : f32 to vector<8x16xf32>
    %c0_i32_1 = arith.constant 0 : i32
    %c8_i32 = arith.constant 8 : i32
    %4 = arith.muli %c0_i32_1, %c8_i32 : i32
    %5 = tpu.assume_multiple %4, 8 : i32
    %6 = arith.index_cast %5 : i32 to index
    %c0 = arith.constant 0 : index
    %7 = vector.load %arg1[%6, %c0] : memref<8x16xf32, #tpu.memory_space<vmem>>, vector<8x16xf32>
    %cst_2 = arith.constant 0.000000e+00 : f32
    %8 = vector.broadcast %cst_2 : f32 to vector<8x16xf32>
    %9 = arith.subf %8, %7 : vector<8x16xf32>
    %10 = math.exp %9 : vector<8x16xf32>
    %c8_i32_3 = arith.constant 8 : i32
    %11 = arith.muli %arg0, %c8_i32_3 : i32
    %12 = arith.addi %11, %5 : i32
    %13 = tpu.iota {dimensions = array<i32: 0>} : vector<8x16xi32>
    %14 = vector.broadcast %12 : i32 to vector<8x16xi32>
    %15 = arith.addi %14, %13 : vector<8x16xi32>
    %c2_i32 = arith.constant 2 : i32
    %16 = vector.broadcast %c2_i32 : i32 to vector<8x16xi32>
    %17 = arith.cmpi slt, %15, %16 : vector<8x16xi32>
    %cst_4 = arith.constant 0.000000e+00 : f32
    %18 = vector.broadcast %cst_4 : f32 to vector<8x16xf32>
    %19 = arith.select %17, %10, %18 : vector<8x16xi1>, vector<8x16xf32>
    %20 = vector.shape_cast %19 : vector<8x16xf32> to vector<1x8x16xf32>
    %cst_5 = arith.constant dense<0.000000e+00> : vector<8x16xf32>
    %21 = vector.multi_reduction <add>, %20, %cst_5 [0] : vector<1x8x16xf32> to vector<8x16xf32>
    %22 = arith.addf %3, %21 : vector<8x16xf32>
    %c1_i32 = arith.constant 1 : i32
    %c0_6 = arith.constant 0 : index
    %c0_7 = arith.constant 0 : index
    %23 = vector.load %arg2[%c0_6, %c0_7] : memref<8x16xf32, #tpu.memory_space<vmem>>, vector<8x16xf32>
    %24 = arith.addf %23, %22 : vector<8x16xf32>
    %c0_8 = arith.constant 0 : index
    %c0_9 = arith.constant 0 : index
    %25 = vector.load %arg2[%c0_8, %c0_9] : memref<8x16xf32, #tpu.memory_space<vmem>>, vector<8x16xf32>
    tpu.vector_store %arg2[%c0_8, %c0_9], %24 {strides = array<i32>} : memref<8x16xf32, #tpu.memory_space<vmem>>, vector<8x16xf32>,
    return
  }
  func.func @transform_0(%arg0: i32) -> (i32, i32) {
    %c0_i32 = arith.constant 0 : i32
    %c0_i32_0 = arith.constant 0 : i32
    return %arg0, %c0_i32 : i32, i32
  }
  func.func @transform_1(%arg0: i32) -> (i32, i32) {
    %c0_i32 = arith.constant 0 : i32
    %c0_i32_0 = arith.constant 0 : i32
    %c0_i32_1 = arith.constant 0 : i32
    return %c0_i32, %c0_i32_0 : i32, i32
  }
}

</mosaic_0001>

<bundles_post_ra>
// kernel: tpu_custom_call.1
= control target key start
LH: loop header
LB: loop body
LE: loop exit
PB: predicated region body
PF: predicated region fallthrough
CT: control target
= control target key end

     0   :  { %6 = vsyncpa [#allocation3], 0  ;;  %s158_s0 = inlined_call_operand.hbm [shape: f32[2,16], index: 0, kind: input, shape index: {}]   ;;  %s159_s1 = inlined_call_operand.hbm [shape: f32[8,16], index: 1, kind: output, shape index: {}]  }
   0x1   :  { %7 = vsyncpa [#allocation4], 0 }
   0x2   :  { %12 = vsyncadd [#allocation3], 96  ;;  %s117_s6 = smov [#allocation2]   ;;  %s69_s10 = scalar_lea.hbm %s158_s0, 32 }
   0x3   :  { %s13_s7 = sshll.u32 %s117_s6, 4  ;;  %p70_p0 = scmp.ne.s32.totalorder %s158_s0, %s69_s10  ;;  %s14_s7 = int_to_ptr.vmem [resolvable:$true] %s13_s7 }
   0x4   :  { %p73_p1 = scmp.lt.u32.totalorder %s69_s10, %s158_s0 }
   0x6   :  { %p75_p2 = pnand %p73_p1, %p70_p0 }
   0x8   :  { %78 = shalt.err (!%p75_p2)
}
   0x9   :  { %s79_s15 = scalar_lea.vmem %s14_s7, 32  ;;  %s83_s16 = scalar_lea.vmem %s14_s7, 128 }
   0xa   :  { %p80_p3 = scmp.ne.s32.totalorder %s14_s7, %s79_s15  ;;  %p84_p4 = scmp.lt.s32.totalorder %s14_s7, %s14_s7 }
   0xb   :  { %p85_p5 = scmp.lt.s32.totalorder %s83_s16, %s79_s15 }
   0xd   :  { %p86_p6 = por %p85_p5, %p84_p4 }
   0xf   :  { %p87_p7 = pnand %p86_p6, %p80_p3 }
  0x11   :  { %90 = shalt.err (!%p87_p7)
}
  0x12   :  { %s118_s17 = smov 32   ;;  %s119_s18 = smov 2  }
  0x13   :  { %19 = dma.hbm_to_vmem [thread:$0]  %s158_s0, 32, %s14_s7, [#allocation3], %s118_s17, %s118_s17, %s119_s18  }
  0x14   :  { %113 = dma.done.wait [#allocation3], 128  }
  0x15   :  { %114 = vsyncadd [#allocation3], 4294967168  ;;  %vm27_vm0 = vcmask 130048   ;;  %v120_v0 = vmov 0.0   ;;  %v29_v1 = vld [vmem:[#allocation2] sm:$0xff]  ;;  %v35_v4 = vlaneseq  ;;  %s121_s21 = smov [#allocation5]  }
  0x16   :  { %28 = vst.msk [vmem:[#allocation5] sm:$0xff] %vm27_vm0, %v120_v0  ;;  %v30_v2 = vsub.f32 0.0, %v29_v1  ;;  %s53_s22 = sshll.u32 %s121_s21, 4  ;;  %s54_s22 = int_to_ptr.vmem [resolvable:$true] %s53_s22 }
  0x17   :  { %v36_v5 = vshrl.u32 %v35_v4, 7  ;;  %s91_s0 = scalar_lea.vmem %s54_s22, 128  ;;  %p96_p9 = scmp.lt.s32.totalorder %s54_s22, %s54_s22 }
  0x18   :  { %v31_v3 = vmul.f32 1.442695, %v30_v2  ;;  %p92_p8 = scmp.ne.s32.totalorder %s54_s22, %s91_s0  ;;  %p97_p10 = scmp.lt.s32.totalorder %s91_s0, %s91_s0 }
  0x19   :  { %vm39_vm1 = vcmp.lt.s32.totalorder %v36_v5, 2 }
  0x1a   :  { %67 = vpow2.f32 %v31_v3  ;;  %p98_p11 = por %p97_p10, %p96_p9 }
  0x1c   :  { %p99_p12 = pnand %p98_p11, %p92_p8 }
  0x1d   :  { %v43_v6 = vld [vmem:[#allocation5] sm:$0xff] }
  0x24   :  { %v68_v7 = vpop.eup %67 }
  0x25   :  { %v40_v8 = vsel %vm39_vm1, %v68_v7, 0.0 }
  0x26   :  { %v44_v9 = vadd.f32 %v43_v6, %v40_v8 }
  0x28   :  { %46 = vst.msk [vmem:[#allocation5] sm:$0xff] %vm27_vm0, %v44_v9 }
  0x29   :  { %102 = shalt.err (!%p99_p12)
}
  0x2a   :  { %s103_s25 = scalar_lea.hbm %s159_s1, 128 }
  0x2b   :  { %p104_p13 = scmp.ne.s32.totalorder %s159_s1, %s103_s25  ;;  %p107_p0 = scmp.lt.u32.totalorder %s103_s25, %s159_s1 }
  0x2d   :  { %p109_p1 = pnand %p107_p0, %p104_p13 }
  0x2f   :  { %112 = shalt.err (!%p109_p1)
}
  0x30   :  { %56 = dma.vmem_to_hbm [thread:$0]  %s54_s22, 128, %s159_s1, [#allocation4]  }
  0x31   :  { %115 = dma.done.wait [#allocation4], 128  }
  0x32   :  { %116 = vsyncadd [#allocation4], 4294967168 }
  0x33   :  { %60 = vsyncpa [#allocation3], 1 }
  0x34   :  { %61 = vsyncpa [#allocation4], 1 }

</bundles_post_ra>
